<compile_context>
chip_gen: v5e
topology: v5e:2x2
jax: 0.10.0
libtpu: 0.0.40
codegen_flags: <defaults>
</compile_context>

<pallas_src>
import jax
import jax.numpy as jnp
from jax.experimental import pallas as pl
from jax.experimental.pallas import tpu as pltpu

HIDDEN_SIZE = 28      # matches `hidden_size = 28` in the reference script
VOCAB_SIZE = 50       # nn.Embedding(input_size, hidden_size) vocab size (synthetic)
SEQ_LEN = 2           # forward() reshapes embedded to (2, 1, -1)

# Parameter-slab row layout (all starts 8-sublane aligned).
ROW_WIH = 0                       # rows [0, H)        : Wih^T  (H, 3H)
ROW_WHH = 32                      # rows [32, 32+H)    : Whh^T  (H, 3H)
ROW_BIH = 64                      # row 64             : b_ih   (1, 3H)
ROW_BHH = 72                      # row 72             : b_hh   (1, 3H)
SLAB_ROWS = 80


def gru_encoder_kernel(x_ref,     # VMEM (T, H)        embedded input sequence
                       h0_ref,    # VMEM (1, H)        initial hidden state
                       p_ref,     # VMEM (80, 3H)      packed parameter slab
                       out_ref):  # VMEM (T, H)        GRU outputs (h_t per step)
    H = HIDDEN_SIZE
    wih = p_ref[ROW_WIH:ROW_WIH + H, :]       # (H, 3H)
    whh = p_ref[ROW_WHH:ROW_WHH + H, :]       # (H, 3H)
    bih = p_ref[ROW_BIH:ROW_BIH + 1, :]       # (1, 3H)
    bhh = p_ref[ROW_BHH:ROW_BHH + 1, :]       # (1, 3H)

    # Input projection for all timesteps and all gates at once — off the recurrent path.
    gi_all = jnp.dot(x_ref[...], wih, preferred_element_type=jnp.float32) + bih   # (T, 3H)

    h = h0_ref[...]                                                               # (1, H)
    for t in range(SEQ_LEN):                  # static unroll over the 2 timesteps
        gi = gi_all[t:t + 1, :]                                                   # (1, 3H)
        gh = jnp.dot(h, whh, preferred_element_type=jnp.float32) + bhh            # (1, 3H)
        r = jax.nn.sigmoid(gi[:, 0:H] + gh[:, 0:H])
        z = jax.nn.sigmoid(gi[:, H:2 * H] + gh[:, H:2 * H])
        n = jnp.tanh(gi[:, 2 * H:3 * H] + r * gh[:, 2 * H:3 * H])
        h = (1.0 - z) * n + z * h
        out_ref[t:t + 1, :] = h


def pack_params(params):
    """Pack torch-layout GRU params into a single (80, 3H) f32 VMEM slab (do once, reuse)."""
    H = HIDDEN_SIZE
    slab = jnp.zeros((SLAB_ROWS, 3 * H), jnp.float32)
    slab = slab.at[ROW_WIH:ROW_WIH + H].set(params["w_ih"].T.astype(jnp.float32))
    slab = slab.at[ROW_WHH:ROW_WHH + H].set(params["w_hh"].T.astype(jnp.float32))
    slab = slab.at[ROW_BIH].set(params["b_ih"].astype(jnp.float32))
    slab = slab.at[ROW_BHH].set(params["b_hh"].astype(jnp.float32))
    return slab


def encoder_rnn_forward(tokens, hidden, params, slab):
    """tokens: (2,) int; hidden: (1,1,H) f32  ->  (output (2,1,H), hidden (1,1,H))."""
    H = HIDDEN_SIZE
    # Embedding lookup in the wrapper (plain XLA gather); clamp guards OOB token ids.
    tok = jnp.clip(tokens.astype(jnp.int32), 0, VOCAB_SIZE - 1)
    x = params["embedding"][tok].astype(jnp.float32)          # (T, H)
    h0 = hidden.reshape(1, H).astype(jnp.float32)

    out = pl.pallas_call(
        gru_encoder_kernel,
        out_shape=jax.ShapeDtypeStruct((SEQ_LEN, H), jnp.float32),
        in_specs=[
            pl.BlockSpec(memory_space=pltpu.MemorySpace.VMEM),   # embedded tokens
            pl.BlockSpec(memory_space=pltpu.MemorySpace.VMEM),   # h0
            pl.BlockSpec(memory_space=pltpu.MemorySpace.VMEM),   # packed params
        ],
        out_specs=pl.BlockSpec(memory_space=pltpu.MemorySpace.VMEM),
    )(x, h0, slab)

    # Final hidden is simply the last output row — no separate hT output buffer.
    return out.reshape(SEQ_LEN, 1, H), out[SEQ_LEN - 1].reshape(1, 1, H)


def reference_forward(tokens, hidden, params):
    """Pure-JAX reference reproducing torch nn.Embedding + nn.GRU semantics."""
    H = HIDDEN_SIZE
    emb = params["embedding"][tokens]                          # (T, H)
    h = hidden.reshape(1, H)
    w_ih, w_hh = params["w_ih"], params["w_hh"]                # (3H, H) torch layout
    b_ih, b_hh = params["b_ih"], params["b_hh"]                # (3H,)
    outs = []
    for t in range(SEQ_LEN):
        x = emb[t][None, :]
        gi = x @ w_ih.T + b_ih                                 # (1, 3H), gates r,z,n
        gh = h @ w_hh.T + b_hh
        r = jax.nn.sigmoid(gi[:, :H] + gh[:, :H])
        z = jax.nn.sigmoid(gi[:, H:2 * H] + gh[:, H:2 * H])
        n = jnp.tanh(gi[:, 2 * H:] + r * gh[:, 2 * H:])
        h = (1.0 - z) * n + z * h
        outs.append(h)
    return jnp.stack(outs, 0).reshape(SEQ_LEN, 1, H), h.reshape(1, 1, H)


def init_params(key):
    """Deterministic synthetic init; shapes match nn.Embedding / nn.GRU(H, H) (torch layout)."""
    H, V = HIDDEN_SIZE, VOCAB_SIZE
    k = jax.random.split(key, 5)
    bound = 1.0 / jnp.sqrt(H)
    return {
        "embedding": jax.random.normal(k[0], (V, H), jnp.float32),
        "w_ih": jax.random.uniform(k[1], (3 * H, H), jnp.float32, -bound, bound),
        "w_hh": jax.random.uniform(k[2], (3 * H, H), jnp.float32, -bound, bound),
        "b_ih": jax.random.uniform(k[3], (3 * H,), jnp.float32, -bound, bound),
        "b_hh": jax.random.uniform(k[4], (3 * H,), jnp.float32, -bound, bound),
    }


if __name__ == "__main__":
    key = jax.random.PRNGKey(0)
    pkey, tkey = jax.random.split(key)
    params = init_params(pkey)
    slab = pack_params(params)   # built once; reused across calls

    # forward(input, hidden): input -> 2 token ids, hidden -> (1, 1, H) (initHidden)
    tokens = jax.random.randint(tkey, (SEQ_LEN,), 0, VOCAB_SIZE, dtype=jnp.int32)
    hidden0 = jnp.zeros((1, 1, HIDDEN_SIZE), jnp.float32)

    out, hT = encoder_rnn_forward(tokens, hidden0, params, slab)
    out = jax.block_until_ready(out)
    hT = jax.block_until_ready(hT)

    ref_out, ref_hT = reference_forward(tokens, hidden0, params)
    assert out.shape == (SEQ_LEN, 1, HIDDEN_SIZE)
    assert hT.shape == (1, 1, HIDDEN_SIZE)
    assert jnp.allclose(out, ref_out, atol=1e-5, rtol=1e-5)
    assert jnp.allclose(hT, ref_hT, atol=1e-5, rtol=1e-5)

    print("KERNEL_OK")
</pallas_src>

<mosaic_0001>
module attributes {stable_mosaic.version = 11 : i64} {
  func.func @gru_encoder_kernel(%arg0: memref<2x28xf32, #tpu.memory_space<vmem>>, %arg1: memref<1x28xf32, #tpu.memory_space<vmem>>, %arg2: memref<80x84xf32, #tpu.memory_space<vmem>>, %arg3: memref<2x28xf32, #tpu.memory_space<vmem>>) attributes {dimension_semantics = [], scalar_prefetch = 0 : i64, scratch_operands = 0 : i64, tpu.core_type = #tpu.core_type<tc>} {
    %c0 = arith.constant 0 : index
    %c0_0 = arith.constant 0 : index
    %0 = vector.load %arg2[%c0, %c0_0] : memref<80x84xf32, #tpu.memory_space<vmem>>, vector<28x84xf32>
    %c32 = arith.constant 32 : index
    %c0_1 = arith.constant 0 : index
    %1 = vector.load %arg2[%c32, %c0_1] : memref<80x84xf32, #tpu.memory_space<vmem>>, vector<28x84xf32>
    %c64 = arith.constant 64 : index
    %c0_2 = arith.constant 0 : index
    %2 = vector.load %arg2[%c64, %c0_2] : memref<80x84xf32, #tpu.memory_space<vmem>>, vector<1x84xf32>
    %c72 = arith.constant 72 : index
    %c0_3 = arith.constant 0 : index
    %3 = vector.load %arg2[%c72, %c0_3] : memref<80x84xf32, #tpu.memory_space<vmem>>, vector<1x84xf32>
    %c0_4 = arith.constant 0 : index
    %c0_5 = arith.constant 0 : index
    %4 = vector.load %arg0[%c0_4, %c0_5] : memref<2x28xf32, #tpu.memory_space<vmem>>, vector<2x28xf32>
    %cst = arith.constant dense<0.000000e+00> : vector<2x84xf32>
    %5 = tpu.matmul %4, %0, %cst {dimension_numbers = #tpu.dot_dimension_numbers<[1], [0], [0], [1], [0, 0, 1, 1], [], []>} : vector<2x28xf32>, vector<28x84xf32>, vector<2x84xf32> -> vector<2x84xf32>
    %6 = vector.broadcast %2 : vector<1x84xf32> to vector<2x84xf32>
    %7 = arith.addf %5, %6 : vector<2x84xf32>
    %c0_6 = arith.constant 0 : index
    %c0_7 = arith.constant 0 : index
    %8 = vector.load %arg1[%c0_6, %c0_7] : memref<1x28xf32, #tpu.memory_space<vmem>>, vector<1x28xf32>
    %9 = vector.extract_strided_slice %7 {offsets = [0, 0], sizes = [1, 84], strides = [1, 1]} : vector<2x84xf32> to vector<1x84xf32>
    %cst_8 = arith.constant dense<0.000000e+00> : vector<1x84xf32>
    %10 = tpu.matmul %8, %1, %cst_8 {dimension_numbers = #tpu.dot_dimension_numbers<[1], [0], [0], [1], [0, 0, 1, 1], [], []>} : vector<1x28xf32>, vector<28x84xf32>, vector<1x84xf32> -> vector<1x84xf32>
    %11 = arith.addf %10, %3 : vector<1x84xf32>
    %12 = vector.extract_strided_slice %9 {offsets = [0, 0], sizes = [1, 28], strides = [1, 1]} : vector<1x84xf32> to vector<1x28xf32>
    %13 = vector.extract_strided_slice %11 {offsets = [0, 0], sizes = [1, 28], strides = [1, 1]} : vector<1x84xf32> to vector<1x28xf32>
    %14 = arith.addf %12, %13 : vector<1x28xf32>
    %15 = arith.negf %14 : vector<1x28xf32>
    %16 = math.exp %15 : vector<1x28xf32>
    %cst_9 = arith.constant 1.000000e+00 : f32
    %17 = vector.broadcast %cst_9 : f32 to vector<1x28xf32>
    %18 = arith.addf %17, %16 : vector<1x28xf32>
    %19 = arith.divf %17, %18 : vector<1x28xf32>
    %20 = vector.extract_strided_slice %9 {offsets = [0, 28], sizes = [1, 28], strides = [1, 1]} : vector<1x84xf32> to vector<1x28xf32>
    %21 = vector.extract_strided_slice %11 {offsets = [0, 28], sizes = [1, 28], strides = [1, 1]} : vector<1x84xf32> to vector<1x28xf32>
    %22 = arith.addf %20, %21 : vector<1x28xf32>
    %23 = arith.negf %22 : vector<1x28xf32>
    %24 = math.exp %23 : vector<1x28xf32>
    %cst_10 = arith.constant 1.000000e+00 : f32
    %25 = vector.broadcast %cst_10 : f32 to vector<1x28xf32>
    %26 = arith.addf %25, %24 : vector<1x28xf32>
    %27 = arith.divf %25, %26 : vector<1x28xf32>
    %28 = vector.extract_strided_slice %9 {offsets = [0, 56], sizes = [1, 28], strides = [1, 1]} : vector<1x84xf32> to vector<1x28xf32>
    %29 = vector.extract_strided_slice %11 {offsets = [0, 56], sizes = [1, 28], strides = [1, 1]} : vector<1x84xf32> to vector<1x28xf32>
    %30 = arith.mulf %19, %29 : vector<1x28xf32>
    %31 = arith.addf %28, %30 : vector<1x28xf32>
    %32 = math.tanh %31 : vector<1x28xf32>
    %cst_11 = arith.constant 1.000000e+00 : f32
    %33 = vector.broadcast %cst_11 : f32 to vector<1x28xf32>
    %34 = arith.subf %33, %27 : vector<1x28xf32>
    %35 = arith.mulf %34, %32 : vector<1x28xf32>
    %36 = arith.mulf %27, %8 : vector<1x28xf32>
    %37 = arith.addf %35, %36 : vector<1x28xf32>
    %c0_12 = arith.constant 0 : index
    %c0_13 = arith.constant 0 : index
    %38 = vector.load %arg3[%c0_12, %c0_13] : memref<2x28xf32, #tpu.memory_space<vmem>>, vector<1x28xf32>
    tpu.vector_store %arg3[%c0_12, %c0_13], %37 {strides = array<i32>} : memref<2x28xf32, #tpu.memory_space<vmem>>, vector<1x28xf32>,
    %39 = vector.extract_strided_slice %7 {offsets = [1, 0], sizes = [1, 84], strides = [1, 1]} : vector<2x84xf32> to vector<1x84xf32>
    %cst_14 = arith.constant dense<0.000000e+00> : vector<1x84xf32>
    %40 = tpu.matmul %37, %1, %cst_14 {dimension_numbers = #tpu.dot_dimension_numbers<[1], [0], [0], [1], [0, 0, 1, 1], [], []>} : vector<1x28xf32>, vector<28x84xf32>, vector<1x84xf32> -> vector<1x84xf32>
    %41 = arith.addf %40, %3 : vector<1x84xf32>
    %42 = vector.extract_strided_slice %39 {offsets = [0, 0], sizes = [1, 28], strides = [1, 1]} : vector<1x84xf32> to vector<1x28xf32>
    %43 = vector.extract_strided_slice %41 {offsets = [0, 0], sizes = [1, 28], strides = [1, 1]} : vector<1x84xf32> to vector<1x28xf32>
    %44 = arith.addf %42, %43 : vector<1x28xf32>
    %45 = arith.negf %44 : vector<1x28xf32>
    %46 = math.exp %45 : vector<1x28xf32>
    %cst_15 = arith.constant 1.000000e+00 : f32
    %47 = vector.broadcast %cst_15 : f32 to vector<1x28xf32>
    %48 = arith.addf %47, %46 : vector<1x28xf32>
    %49 = arith.divf %47, %48 : vector<1x28xf32>
    %50 = vector.extract_strided_slice %39 {offsets = [0, 28], sizes = [1, 28], strides = [1, 1]} : vector<1x84xf32> to vector<1x28xf32>
    %51 = vector.extract_strided_slice %41 {offsets = [0, 28], sizes = [1, 28], strides = [1, 1]} : vector<1x84xf32> to vector<1x28xf32>
    %52 = arith.addf %50, %51 : vector<1x28xf32>
    %53 = arith.negf %52 : vector<1x28xf32>
    %54 = math.exp %53 : vector<1x28xf32>
    %cst_16 = arith.constant 1.000000e+00 : f32
    %55 = vector.broadcast %cst_16 : f32 to vector<1x28xf32>
    %56 = arith.addf %55, %54 : vector<1x28xf32>
    %57 = arith.divf %55, %56 : vector<1x28xf32>
    %58 = vector.extract_strided_slice %39 {offsets = [0, 56], sizes = [1, 28], strides = [1, 1]} : vector<1x84xf32> to vector<1x28xf32>
    %59 = vector.extract_strided_slice %41 {offsets = [0, 56], sizes = [1, 28], strides = [1, 1]} : vector<1x84xf32> to vector<1x28xf32>
    %60 = arith.mulf %49, %59 : vector<1x28xf32>
    %61 = arith.addf %58, %60 : vector<1x28xf32>
    %62 = math.tanh %61 : vector<1x28xf32>
    %cst_17 = arith.constant 1.000000e+00 : f32
    %63 = vector.broadcast %cst_17 : f32 to vector<1x28xf32>
    %64 = arith.subf %63, %57 : vector<1x28xf32>
    %65 = arith.mulf %64, %62 : vector<1x28xf32>
    %66 = arith.mulf %57, %37 : vector<1x28xf32>
    %67 = arith.addf %65, %66 : vector<1x28xf32>
    %c1 = arith.constant 1 : index
    %c0_18 = arith.constant 0 : index
    %68 = vector.load %arg3[%c1, %c0_18] : memref<2x28xf32, #tpu.memory_space<vmem>>, vector<1x28xf32>
    tpu.vector_store %arg3[%c1, %c0_18], %67 {strides = array<i32>} : memref<2x28xf32, #tpu.memory_space<vmem>>, vector<1x28xf32>,
    return
  }
}

</mosaic_0001>

<bundles_post_ra>
// kernel: tpu_custom_call.1
= control target key start
LH: loop header
LB: loop body
LE: loop exit
PB: predicated region body
PF: predicated region fallthrough
CT: control target
= control target key end

     0   :  { %8 = vsyncpa [#allocation3], 0  ;;  %s456_s0 = inlined_call_operand.hbm [shape: f32[2,28], index: 0, kind: input, shape index: {}]   ;;  %s457_s1 = inlined_call_operand.hbm [shape: f32[1,28], index: 1, kind: input, shape index: {}]   ;;  %s458_s2 = inlined_call_operand.hbm [shape: f32[80,84], index: 2, kind: input, shape index: {}]   ;;  %s459_s3 = inlined_call_operand.hbm [shape: f32[2,28], index: 3, kind: output, shape index: {}]  }
   0x1   :  { %9 = vsyncpa [#allocation6], 0  ;;  %s27_s14 = sshll.u32 %s457_s1, 4  ;;  %s28_s14 = int_to_ptr.hbm [resolvable:$true] %s27_s14 }
   0x2   :  { %10 = vsyncpa [#allocation4], 0  ;;  %s397_s15 = smov [#allocation5]   ;;  %s16_s19 = sshll.u32 %s456_s0, 4  ;;  %s17_s19 = int_to_ptr.hbm [resolvable:$true] %s16_s19 }
   0x3   :  { %s29_s16 = sshll.u32 %s397_s15, 4  ;;  %s398_s20 = smov [#allocation2]   ;;  %s30_s16 = int_to_ptr.vmem [resolvable:$true] %s29_s16 }
   0x4   :  { %32 = dma.hbm_to_vmem [thread:$0]  %s28_s14, 16, %s30_s16, [#allocation6]  }
   0x5   :  { %s18_s21 = sshll.u32 %s398_s20, 4  ;;  %s37_s24 = sshll.u32 %s458_s2, 4  ;;  %s19_s21 = int_to_ptr.vmem [resolvable:$true] %s18_s21  ;;  %s38_s24 = int_to_ptr.hbm [resolvable:$true] %s37_s24 }
   0x6   :  { %21 = dma.hbm_to_vmem [thread:$0]  %s17_s19, 32, %s19_s21, [#allocation3]  }
   0x7   :  { %s399_s1 = smov [#allocation7]   ;;  %s400_s26 = smov 128  }
   0x8   :  { %s39_s25 = sshll.u32 %s399_s1, 4  ;;  %s401_s27 = smov 8   ;;  %s40_s25 = int_to_ptr.vmem [resolvable:$true] %s39_s25 }
   0x9   :  { %45 = dma.hbm_to_vmem [thread:$0]  %s38_s24, 1280, %s40_s25, [#allocation6], %s400_s26, %s400_s26, %s401_s27  }
   0xa   :  { %391 = dma.done.wait [#allocation3], 32  }
   0xb   :  { %392 = vsyncadd [#allocation3], 4294967264 }
   0xc   :  { %393 = dma.done.wait [#allocation6], 1296  }
   0xd   :  { %394 = vsyncadd [#allocation6], 4294966000  ;;  %vm74_vm0 = vcmask 1043456   ;;  %v61_v0 = vld [vmem:[#allocation7 + $0x18] sm:$0xf]  ;;  %v60_v2 = vld [vmem:[#allocation7 + $0x10] sm:$0xff] }
   0xe   :  { %v65_v1 = vld [vmem:[#allocation7 + $0x38] sm:$0xf]  ;;  %263 = vmatpush.msk.msra.mxu0 %vm74_vm0, %v61_v0  ;;  %v64_v3 = vld [vmem:[#allocation7 + $0x30] sm:$0xff]  ;;  %v59_v4 = vld [vmem:[#allocation7 + $0x8] sm:$0xff]  ;;  %vm70_vm1 = vcmask 228352   ;;  %s402_s0 = smov 72  }
   0xf   :  { %265 = vmatpush.msk.msra.mxu1 %vm74_vm0, %v65_v1  ;;  %v63_v5 = vld [vmem:[#allocation7 + $0x28] sm:$0xff]  ;;  %268 = vmatpush.msk.msra.mxu2 %vm74_vm0, %v65_v1  ;;  %v58_v6 = vld [vmem:[#allocation7] sm:$0xff]  ;;  %v68_v8 = vld [vmem:[#allocation2] sm:$0x3]  ;;  %s403_s2 = smov 56   ;;  %s404_s28 = smov 100  }
  0x10   :  { %91 = vmatpush.msra.mxu0 %v60_v2  ;;  %v62_v7 = vld [vmem:[#allocation7 + $0x20] sm:$0xff]  ;;  %v98_v9 = vld [vmem:[#allocation5] sm:$0x1]  ;;  %v67_v10 = vld [vmem:[#allocation7 + $0x48] sm:$0x1]  ;;  %s405_s29 = smov 28  }
  0x11   :  { %118 = vmatpush.msra.mxu1 %v64_v3  ;;  %189 = vmatpush.msra.mxu2 %v64_v3  ;;  %v282_v13 = vld [vmem:[#allocation7 + $0x40] ss:$0 sm:$0xff]  ;;  %v281_v35 = vld [vmem:[#allocation5] ss:$0 sm:$0xff]  ;;  %vm172_vm6 = vcmask 221184   ;;  %s406_s30 = smov [#allocation8]  }
  0x12   :  { %92 = vmatpush.msra.mxu0 %v59_v4  ;;  %s250_s4 = sshll.u32 %s406_s30, 4  ;;  %s252_s7 = sshll.u32 %s459_s3, 4  ;;  %vm243_vm11 = vcmask 222209   ;;  %s251_s4 = int_to_ptr.vmem [resolvable:$true] %s250_s4  ;;  %s253_s7 = int_to_ptr.hbm [resolvable:$true] %s252_s7 }
  0x13   :  { %119 = vmatpush.msra.mxu1 %v63_v5  ;;  %190 = vmatpush.msra.mxu2 %v63_v5 }
  0x14   :  { %93 = vmatpush.msra.mxu0 %v58_v6 }
  0x15   :  { %120 = vmatpush.msra.mxu1 %v62_v7  ;;  %264 = vmatmul.msk.f32.vlgmr.msra.gmra.mxu0 %vm70_vm1, %v68_v8 }
  0x16   :  { %266 = vmatmul.msk.f32.vlgmr.msra.gmra.mxu1 %vm70_vm1, %v98_v9  ;;  %191 = vmatpush.msra.mxu2 %v62_v7 }
  0x92   :  { %v95_v14 = vpop.f32.mrf.mxu0 }
  0x93   :  { %v122_v11 = vpop.f32.mrf.mxu1  ;;  %v439_v15 = vadd.f32 %v282_v13, %v95_v14 }
  0x94   :  { %v123_v12 = vadd.f32 %v122_v11, %v67_v10 }
  0x96   :  { %146 = vrot.lane.b32.xlu0 %v123_v12, %s402_s0  ;;  %v125_v16 = vadd.f32 %v123_v12, %v439_v15 }
  0x98   :  { %v267_v17 = vmul.f32 -1.442695, %v125_v16 }
  0x9a   :  { %283 = vpow2.f32 %v267_v17 }
  0xa0   :  { %v284_v18 = vpop.eup %283 }
  0xa1   :  { %v129_v19 = vadd.f32 1.0, %v284_v18 }
  0xa3   :  { %285 = vrcp.f32 %v129_v19  ;;  %v141_v25 = vand.u32 2147483648, %v129_v19  ;;  %vm135_vm3 = vweird.f32 %v129_v19  ;;  %v139_v26 = vand.u32 2147483647, %v129_v19 }
  0xa5   :  { %v142_v28 = vor.u32 1.1754944e-38, %v141_v25  ;;  %vm140_vm5 = vcmp.eq.f32.partialorder %v139_v26, 8.507059e+37 }
  0xa9   :  { %v286_v20 = vpop.eup %285 }
  0xaa   :  { %v131_v21 = vmul.f32 %v286_v20, %v129_v19  ;;  %vm136_vm2 = vweird.f32 %v286_v20 }
  0xab   :  { %vm137_vm4 = vmor %vm135_vm3, %vm136_vm2 }
  0xac   :  { %v132_v22 = vsub.f32 1.0, %v131_v21 }
  0xae   :  { %v133_v23 = vmul.f32 %v286_v20, %v132_v22 }
  0xb0   :  { %v134_v24 = vadd.f32 %v286_v20, %v133_v23 }
  0xb2   :  { %v138_v27 = vsel %vm137_vm4, %v286_v20, %v134_v24 }
  0xb3   :  { %v143_v30 = vsel %vm140_vm5, %v142_v28, %v138_v27 }
  0xb4   :  { %v156_v37 = vsub.f32 1.0, %v143_v30 }
 0x108   :  { %v147_v29 = vpop.permute.xlu0 %146 }
 0x109   :  { %v149_v31 = vmul.f32 %v147_v29, %v143_v30 }
 0x10b   :  { %151 = vrot.lane.b32.xlu0 %v149_v31, %s403_s2 }
 0x17d   :  { %v152_v32 = vpop.permute.xlu0 %151 }
 0x17e   :  { %v154_v33 = vadd.f32 %v152_v32, %v439_v15 }
 0x180   :  { %287 = vtanh.f32 %v154_v33 }
 0x186   :  { %v288_v34 = vpop.eup %287 }
 0x187   :  { %158 = vrot.lane.b32.xlu1 %v288_v34, %s404_s28 }
 0x18f   :  { %163 = vrot.lane.b32.xlu1 %v281_v35, %s405_s29 }
 0x1f9   :  { %v159_v36 = vpop.permute.xlu1 %158 }
 0x1fa   :  { %v161_v39 = vmul.f32 %v159_v36, %v156_v37 }
 0x201   :  { %v164_v38 = vpop.permute.xlu1 %163 }
 0x202   :  { %v166_v40 = vmul.f32 %v164_v38, %v143_v30 }
 0x204   :  { %v167_v41 = vadd.f32 %v166_v40, %v161_v39 }
 0x206   :  { %169 = vrot.lane.b32.xlu2 %v167_v41, %s404_s28  ;;  %v235_v58 = vrot.slane %v167_v41, 7 }
 0x260   :  { %v170_v42 = vpop.permute.xlu2 %169 }
 0x261   :  { %173 = vst.msk [vmem:[#allocation8] sm:$0x1] %vm172_vm6, %v170_v42  ;;  %269 = vmatmul.msk.f32.vlgmr.msra.gmra.mxu2 %vm70_vm1, %v170_v42 }
 0x2e4   :  { %v193_v43 = vpop.f32.mrf.mxu2 }
 0x2e5   :  { %v194_v44 = vadd.f32 %v193_v43, %v67_v10 }
 0x2e7   :  { %v197_v45 = vrot.slane %v194_v44, 7 }
 0x2e9   :  { %v199_v46 = vadd.f32 %v197_v45, %v439_v15  ;;  %219 = vrot.lane.b32.xlu2 %v197_v45, %s402_s0 }
 0x2eb   :  { %v270_v47 = vmul.f32 -1.442695, %v199_v46 }
 0x2ed   :  { %289 = vpow2.f32 %v270_v47 }
 0x2f3   :  { %v290_v48 = vpop.eup %289 }
 0x2f4   :  { %v203_v49 = vadd.f32 1.0, %v290_v48 }
 0x2f6   :  { %291 = vrcp.f32 %v203_v49  ;;  %v215_v53 = vand.u32 2147483648, %v203_v49  ;;  %v213_v55 = vand.u32 2147483647, %v203_v49  ;;  %vm209_vm8 = vweird.f32 %v203_v49 }
 0x2f8   :  { %v216_v57 = vor.u32 1.1754944e-38, %v215_v53  ;;  %vm214_vm10 = vcmp.eq.f32.partialorder %v213_v55, 8.507059e+37 }
 0x2fc   :  { %v292_v50 = vpop.eup %291 }
 0x2fd   :  { %v205_v51 = vmul.f32 %v292_v50, %v203_v49  ;;  %vm210_vm7 = vweird.f32 %v292_v50 }
 0x2fe   :  { %vm211_vm9 = vmor %vm209_vm8, %vm210_vm7 }
 0x2ff   :  { %v206_v52 = vsub.f32 1.0, %v205_v51 }
 0x301   :  { %v207_v54 = vmul.f32 %v292_v50, %v206_v52 }
 0x303   :  { %v208_v56 = vadd.f32 %v292_v50, %v207_v54 }
 0x305   :  { %v212_v59 = vsel %vm211_vm9, %v292_v50, %v208_v56 }
 0x306   :  { %v217_v60 = vsel %vm214_vm10, %v216_v57, %v212_v59 }
 0x307   :  { %v237_v61 = vmul.f32 %v235_v58, %v217_v60  ;;  %v229_v3 = vsub.f32 1.0, %v217_v60 }
 0x343   :  { %v220_v62 = vpop.permute.xlu2 %219 }
 0x344   :  { %v222_v63 = vmul.f32 %v220_v62, %v217_v60 }
 0x346   :  { %224 = vrot.lane.b32.xlu0 %v222_v63, %s403_s2 }
 0x3b8   :  { %v225_v0 = vpop.permute.xlu0 %224 }
 0x3b9   :  { %v227_v1 = vadd.f32 %v225_v0, %v439_v15 }
 0x3bb   :  { %293 = vtanh.f32 %v227_v1 }
 0x3c1   :  { %v294_v2 = vpop.eup %293 }
 0x3c2   :  { %231 = vrot.lane.b32.xlu1 %v294_v2, %s404_s28 }
 0x434   :  { %v232_v4 = vpop.permute.xlu1 %231 }
 0x435   :  { %v234_v5 = vmul.f32 %v232_v4, %v229_v3 }
 0x437   :  { %v238_v6 = vadd.f32 %v237_v61, %v234_v5 }
 0x439   :  { %240 = vrot.lane.b32.xlu2 %v238_v6, %s404_s28 }
 0x493   :  { %v241_v7 = vpop.permute.xlu2 %240 }
 0x494   :  { %244 = vst.msk [vmem:[#allocation8] sm:$0x2] %vm243_vm11, %v241_v7 }
 0x495   :  { %255 = dma.vmem_to_hbm [thread:$0]  %s251_s4, 32, %s253_s7, [#allocation4]  }
 0x496   :  { %395 = dma.done.wait [#allocation4], 32  }
 0x497   :  { %396 = vsyncadd [#allocation4], 4294967264 }
 0x498   :  { %260 = vsyncpa [#allocation3], 1 }
 0x499   :  { %261 = vsyncpa [#allocation6], 1 }
 0x49a   :  { %262 = vsyncpa [#allocation4], 1 }

</bundles_post_ra>
